<compile_context>
chip_gen: v6e
topology: v6e:2x2x1
jax: 0.10.0
libtpu: 0.0.40
codegen_flags: <defaults>
</compile_context>

<pallas_src>
import jax
import jax.numpy as jnp
from jax.experimental import pallas as pl
from jax.experimental.pallas import tpu as pltpu


def _hbm_copy_kernel(x_hbm_ref, o_hbm_ref):
    # Raw HBM -> HBM DMA of the whole array; TensorCore stays off the
    # critical path (no VMEM staging, no vld/vst).
    def body(sem):
        cp = pltpu.make_async_copy(x_hbm_ref, o_hbm_ref, sem)
        cp.start()
        cp.wait()

    pl.run_scoped(body, pltpu.SemaphoreType.DMA(()))


@jax.jit
def to_device_pallas(x):
    """Identity / device-materialization of `x` via a single HBM->HBM DMA."""
    if x.size == 0:
        # Nothing to copy.
        return x

    orig_shape = x.shape
    # DMA wants at least 1-D; scalars are reshaped (free under jit).
    xw = x.reshape((1,)) if x.ndim == 0 else x

    itemsize = jnp.dtype(xw.dtype).itemsize
    out = pl.pallas_call(
        _hbm_copy_kernel,
        out_shape=jax.ShapeDtypeStruct(xw.shape, xw.dtype),
        in_specs=[pl.BlockSpec(memory_space=pl.ANY)],
        out_specs=pl.BlockSpec(memory_space=pl.ANY),
        cost_estimate=pl.CostEstimate(
            flops=0,
            transcendentals=0,
            bytes_accessed=2 * xw.size * itemsize,
        ),
    )(xw)

    return out.reshape(orig_shape)


if __name__ == "__main__":
    key = jax.random.PRNGKey(0)

    # Image-like NCHW input, consistent with the module's use on images.
    x = jax.random.normal(key, (2, 4, 16, 16), dtype=jnp.float32)
    y = jax.block_until_ready(to_device_pallas(x))
    assert y.shape == x.shape, (y.shape, x.shape)
    assert y.dtype == x.dtype, (y.dtype, x.dtype)
    assert bool(jnp.all(y == x)), "identity copy mismatch (image path)"

    # Ragged (non-128-multiple) size: goes through the exact same DMA path.
    z = jax.random.normal(jax.random.PRNGKey(1), (3, 5, 7), dtype=jnp.float32)
    w = jax.block_until_ready(to_device_pallas(z))
    assert w.shape == z.shape and bool(jnp.all(w == z)), \
        "identity copy mismatch (ragged path)"

    # Narrow dtype sanity check.
    b = jax.random.normal(jax.random.PRNGKey(2), (8, 32), dtype=jnp.bfloat16)
    bw = jax.block_until_ready(to_device_pallas(b))
    assert bw.shape == b.shape and bw.dtype == b.dtype and bool(jnp.all(bw == b)), \
        "identity copy mismatch (bf16 path)"

    print("KERNEL_OK")
</pallas_src>

<mosaic_0001>
module attributes {stable_mosaic.version = 11 : i64} {
  func.func @_hbm_copy_kernel(%arg0: memref<2x4x16x16xf32, #tpu.memory_space<any>>, %arg1: memref<2x4x16x16xf32, #tpu.memory_space<any>>) attributes {dimension_semantics = [], scalar_prefetch = 0 : i64, scratch_operands = 0 : i64, tpu.core_type = #tpu.core_type<tc>} {
    "tpu.region"() ({
      %0 = tpu.sem_alloc : memref<!tpu.dma_semaphore, #tpu.memory_space<semaphore_mem>>
      tpu.enqueue_dma source(%arg0 : memref<2x4x16x16xf32, #tpu.memory_space<any>>) target(%arg1 : memref<2x4x16x16xf32, #tpu.memory_space<any>>) target_semaphore(%0 : memref<!tpu.dma_semaphore, #tpu.memory_space<semaphore_mem>>)
      tpu.wait_dma2 semaphore(%0 : memref<!tpu.dma_semaphore, #tpu.memory_space<semaphore_mem>>) src(%arg0 : memref<2x4x16x16xf32, #tpu.memory_space<any>>) dst(%arg1 : memref<2x4x16x16xf32, #tpu.memory_space<any>>)
      tpu.yield
    }) : () -> ()
    return
  }
}

</mosaic_0001>

<bundles_post_ra>
// kernel: to_device_pallas.1
= control target key start
LH: loop header
LB: loop body
LE: loop exit
PB: predicated region body
PF: predicated region fallthrough
CT: control target
= control target key end

     0   :  { %s23_s6 = smov [#allocation2]   ;;  %s24_s7 = smov 131072   ;;  %s42_s0 = inlined_call_operand.hbm [shape: f32[2,4,16,16], index: 0, kind: input, shape index: {}]   ;;  %s43_s1 = inlined_call_operand.hbm [shape: f32[2,4,16,16], index: 1, kind: output, shape index: {}]  }
   0x1   :  { %s25_s8 = smov 0  }
   0x2   :  { %12 = dma.general %s42_s0, 2048, %s43_s1, %s23_s6, %s24_s7, [#allocation4], %s25_s8, 0  }
   0x3   :  { %21 = dma.done.wait [#allocation2], 2048 }
   0x4   :  { %22 = vsyncadd [#allocation2], 4294965248 }

</bundles_post_ra>
